<compile_context>
chip_gen: v6e
topology: v6e:2x2x1
jax: 0.10.0
libtpu: 0.0.40
codegen_flags: <defaults>
</compile_context>

<pallas_src>
import functools

import jax
import jax.numpy as jnp
from jax.experimental import pallas as pl
from jax.experimental.pallas import tpu as pltpu


def _round_up(x, m):
    return ((x + m - 1) // m) * m


def _cdiv(a, b):
    return -(-a // b)


def _dice_partial_kernel(logits_ref, targets_ref, inter_ref, union_ref, *,
                         s_extent, ts, inner, needs_mask):
    """Accumulate per-row intersection / union partial sums.

    Grid = (row_blocks, spatial_outer [parallel], spatial_inner [reduction]).
    The (1, TR, 1) output blocks are invariant along the inner (arbitrary)
    axis, so they stay resident in VMEM and act as the accumulators; they are
    zeroed at the first inner step of every (row, outer) group.
    """
    si = pl.program_id(2)

    @pl.when(si == 0)
    def _():
        inter_ref[...] = jnp.zeros_like(inter_ref)
        union_ref[...] = jnp.zeros_like(union_ref)

    x = logits_ref[...].astype(jnp.float32)
    t = targets_ref[...].astype(jnp.float32)
    probs = jax.nn.sigmoid(x)

    if needs_mask:
        # Only the last global spatial tile is partial; mask lanes past the
        # true spatial extent (cheap VPU filler, hidden under the HBM stream).
        s_off = (pl.program_id(1) * inner + si) * ts
        col = jax.lax.broadcasted_iota(jnp.int32, x.shape, 1)
        valid = (col + s_off) < s_extent
        probs = jnp.where(valid, probs, 0.0)
        t = jnp.where(valid, t, 0.0)

    inter_ref[...] += jnp.sum(probs * t, axis=-1, keepdims=True)[None, :, :]
    # Fused union reduction: one cross-lane sum of (probs + t) per tile.
    union_ref[...] += jnp.sum(probs + t, axis=-1, keepdims=True)[None, :, :]


def dice_loss(logits, targets, eps=1e-6):
    """Pallas implementation of DiceLoss.forward (returns a scalar)."""
    N, C, H, W = logits.shape
    R, S = N * C, H * W

    # Stream bool masks as int8 (halves/quarters target HBM bytes); every
    # other dtype passes through and is cast to f32 inside the kernel, which
    # matches the exactness of torch's `targets.float()`.
    if targets.dtype == jnp.bool_:
        targets = targets.astype(jnp.int8)

    x = logits.reshape(R, S)
    t = targets.reshape(R, S)

    l_bytes = jnp.dtype(x.dtype).itemsize
    t_bytes = jnp.dtype(t.dtype).itemsize

    # --- Row tiling: full-extent row block -> no row padding, no wasted DMA.
    # Dice shapes typically have tiny R = N*C; only tile rows if R is huge.
    # (Garbage rows of a partial trailing row block are clipped on writeback.)
    TR = R if R <= 1024 else 512            # 512 is a multiple of 8 -> legal block dim
    RB = _cdiv(R, TR)

    # --- Spatial tiling by VMEM byte budget (~2 MiB of inputs live per step).
    per_step_budget = 2 * 1024 * 1024
    ts_budget = max(128, (per_step_budget // (TR * (l_bytes + t_bytes))) // 128 * 128)

    if S <= 256:
        # One full-extent spatial block (legal for any S, no mask needed).
        TS, NB = S, 1
    else:
        nb = max(2, _cdiv(S, ts_budget))     # >=2 blocks: DMA/compute overlap
        max_nb = _cdiv(S, 128)
        if nb % 2 and nb < max_nb:           # prefer an even count -> v7x 2-core split
            nb += 1
        TS = _round_up(_cdiv(S, nb), 128)
        NB = _cdiv(S, TS)

    needs_mask = (S % TS) != 0
    OUTER = 2 if (NB >= 2 and NB % 2 == 0) else 1
    INNER = NB // OUTER

    kernel = functools.partial(
        _dice_partial_kernel,
        s_extent=S, ts=TS, inner=INNER, needs_mask=needs_mask)

    in_map = lambda rb, so, si: (rb, so * INNER + si)
    out_map = lambda rb, so, si: (so, rb, 0)

    inter, union = pl.pallas_call(
        kernel,
        out_shape=[
            jax.ShapeDtypeStruct((OUTER, R, 1), jnp.float32),
            jax.ShapeDtypeStruct((OUTER, R, 1), jnp.float32),
        ],
        grid_spec=pltpu.PrefetchScalarGridSpec(
            num_scalar_prefetch=0,
            grid=(RB, OUTER, INNER),
            in_specs=[
                pl.BlockSpec((TR, TS), in_map),
                pl.BlockSpec((TR, TS), in_map),
            ],
            # Per-(row-block, outer-group) partial sums; resident across the
            # inner (reduction) axis and written back once per group.
            out_specs=[
                pl.BlockSpec((1, TR, 1), out_map),
                pl.BlockSpec((1, TR, 1), out_map),
            ],
        ),
        compiler_params=pltpu.CompilerParams(
            # Row blocks and spatial groups are independent -> parallel
            # (lets v7x shard the reduction across both cores); the inner
            # spatial axis is the accumulated reduction -> arbitrary.
            dimension_semantics=("parallel", "parallel", "arbitrary")),
    )(x, t)

    # Tiny epilogue in plain JAX: combine per-group partials, dice, mean.
    inter = jnp.sum(inter[..., 0], axis=0)   # (R,)
    union = jnp.sum(union[..., 0], axis=0)   # (R,)
    dice = (2.0 * inter + eps) / (union + eps)
    return 1.0 - jnp.mean(dice)


def dice_loss_ref(logits, targets, eps=1e-6):
    probs = jax.nn.sigmoid(logits)
    targets = targets.astype(jnp.float32)
    intersection = jnp.sum(probs * targets, axis=(2, 3))
    union = jnp.sum(probs, axis=(2, 3)) + jnp.sum(targets, axis=(2, 3))
    dice = (2.0 * intersection + eps) / (union + eps)
    return 1.0 - jnp.mean(dice)


if __name__ == "__main__":
    key = jax.random.PRNGKey(0)
    k1, k2 = jax.random.split(key)

    # Shape 1: the canonical small case (exercises the 2-way spatial split).
    N, C, H, W = 2, 4, 16, 16
    logits = jax.random.normal(k1, (N, C, H, W), dtype=jnp.float32)
    targets = jax.random.uniform(k2, (N, C, H, W)) > 0.5  # bool mask

    loss = jax.block_until_ready(dice_loss(logits, targets))
    ref = jax.block_until_ready(dice_loss_ref(logits, targets))
    assert jnp.allclose(loss, ref, atol=1e-5, rtol=1e-5), (loss, ref)

    # Shape 2: odd row count + non-128-multiple spatial extent -> exercises
    # the full-extent row block and the partial-tile lane mask.
    N2, C2, H2, W2 = 2, 3, 18, 18
    logits2 = jax.random.normal(k1, (N2, C2, H2, W2), dtype=jnp.float32)
    targets2 = jax.random.uniform(k2, (N2, C2, H2, W2)) > 0.5

    loss2 = jax.block_until_ready(dice_loss(logits2, targets2))
    ref2 = jax.block_until_ready(dice_loss_ref(logits2, targets2))
    assert jnp.allclose(loss2, ref2, atol=1e-5, rtol=1e-5), (loss2, ref2)

    print("KERNEL_OK")
</pallas_src>

<mosaic_0001>
module attributes {stable_mosaic.version = 11 : i64} {
  func.func @_dice_partial_kernel(%arg0: i32, %arg1: i32, %arg2: i32, %arg3: memref<8x256xf32, #tpu.memory_space<vmem>>, %arg4: memref<8x256xi8, #tpu.memory_space<vmem>>, %arg5: memref<1x8x1xf32, #tpu.memory_space<vmem>>, %arg6: memref<1x8x1xf32, #tpu.memory_space<vmem>>) attributes {dimension_semantics = [#tpu.dimension_semantics<parallel>, #tpu.dimension_semantics<parallel>, #tpu.dimension_semantics<arbitrary>], iteration_bounds = array<i64: 1, 1, 1>, scalar_prefetch = 0 : i64, scratch_operands = 0 : i64, tpu.core_type = #tpu.core_type<tc>, window_params = [{transform_indices = @transform_0, window_bounds = array<i64: 8, 256>}, {transform_indices = @transform_1, window_bounds = array<i64: 8, 256>}, {transform_indices = @transform_2, window_bounds = array<i64: 1, 8, 1>}, {transform_indices = @transform_3, window_bounds = array<i64: 1, 8, 1>}]} {
    %c0_i32 = arith.constant 0 : i32
    %0 = arith.cmpi eq, %arg2, %c0_i32 : i32
    %1 = arith.extui %0 : i1 to i32
    %c0_i32_0 = arith.constant 0 : i32
    %2 = arith.cmpi ne, %1, %c0_i32_0 : i32
    scf.if %2 {
      %cst_18 = arith.constant 0.000000e+00 : f32
      %25 = vector.broadcast %cst_18 : f32 to vector<1x8x1xf32>
      %c0_19 = arith.constant 0 : index
      %c0_20 = arith.constant 0 : index
      %c0_21 = arith.constant 0 : index
      %26 = vector.load %arg5[%c0_19, %c0_20, %c0_21] : memref<1x8x1xf32, #tpu.memory_space<vmem>>, vector<1x8x1xf32>
      tpu.vector_store %arg5[%c0_19, %c0_20, %c0_21], %25 {strides = array<i32>} : memref<1x8x1xf32, #tpu.memory_space<vmem>>, vector<1x8x1xf32>,
      %cst_22 = arith.constant 0.000000e+00 : f32
      %27 = vector.broadcast %cst_22 : f32 to vector<1x8x1xf32>
      %c0_23 = arith.constant 0 : index
      %c0_24 = arith.constant 0 : index
      %c0_25 = arith.constant 0 : index
      %28 = vector.load %arg6[%c0_23, %c0_24, %c0_25] : memref<1x8x1xf32, #tpu.memory_space<vmem>>, vector<1x8x1xf32>
      tpu.vector_store %arg6[%c0_23, %c0_24, %c0_25], %27 {strides = array<i32>} : memref<1x8x1xf32, #tpu.memory_space<vmem>>, vector<1x8x1xf32>,
    } else {
    }
    %c0 = arith.constant 0 : index
    %c0_1 = arith.constant 0 : index
    %3 = vector.load %arg3[%c0, %c0_1] : memref<8x256xf32, #tpu.memory_space<vmem>>, vector<8x256xf32>
    %c0_2 = arith.constant 0 : index
    %c0_3 = arith.constant 0 : index
    %4 = vector.load %arg4[%c0_2, %c0_3] : memref<8x256xi8, #tpu.memory_space<vmem>>, vector<8x256xi8>
    %5 = arith.sitofp %4 : vector<8x256xi8> to vector<8x256xf32>
    %6 = arith.negf %3 : vector<8x256xf32>
    %7 = math.exp %6 : vector<8x256xf32>
    %cst = arith.constant 1.000000e+00 : f32
    %8 = vector.broadcast %cst : f32 to vector<8x256xf32>
    %9 = arith.addf %8, %7 : vector<8x256xf32>
    %10 = arith.divf %8, %9 : vector<8x256xf32>
    %c0_4 = arith.constant 0 : index
    %c0_5 = arith.constant 0 : index
    %c0_6 = arith.constant 0 : index
    %11 = vector.load %arg5[%c0_4, %c0_5, %c0_6] : memref<1x8x1xf32, #tpu.memory_space<vmem>>, vector<1x8x1xf32>
    %12 = arith.mulf %10, %5 : vector<8x256xf32>
    %cst_7 = arith.constant dense<0.000000e+00> : vector<8xf32>
    %13 = vector.multi_reduction <add>, %12, %cst_7 [1] : vector<8x256xf32> to vector<8xf32>
    %14 = vector.shape_cast %13 : vector<8xf32> to vector<8x1xf32>
    %15 = vector.shape_cast %14 : vector<8x1xf32> to vector<1x8x1xf32>
    %16 = arith.addf %11, %15 : vector<1x8x1xf32>
    %c0_8 = arith.constant 0 : index
    %c0_9 = arith.constant 0 : index
    %c0_10 = arith.constant 0 : index
    %17 = vector.load %arg5[%c0_8, %c0_9, %c0_10] : memref<1x8x1xf32, #tpu.memory_space<vmem>>, vector<1x8x1xf32>
    tpu.vector_store %arg5[%c0_8, %c0_9, %c0_10], %16 {strides = array<i32>} : memref<1x8x1xf32, #tpu.memory_space<vmem>>, vector<1x8x1xf32>,
    %c0_11 = arith.constant 0 : index
    %c0_12 = arith.constant 0 : index
    %c0_13 = arith.constant 0 : index
    %18 = vector.load %arg6[%c0_11, %c0_12, %c0_13] : memref<1x8x1xf32, #tpu.memory_space<vmem>>, vector<1x8x1xf32>
    %19 = arith.addf %10, %5 : vector<8x256xf32>
    %cst_14 = arith.constant dense<0.000000e+00> : vector<8xf32>
    %20 = vector.multi_reduction <add>, %19, %cst_14 [1] : vector<8x256xf32> to vector<8xf32>
    %21 = vector.shape_cast %20 : vector<8xf32> to vector<8x1xf32>
    %22 = vector.shape_cast %21 : vector<8x1xf32> to vector<1x8x1xf32>
    %23 = arith.addf %18, %22 : vector<1x8x1xf32>
    %c0_15 = arith.constant 0 : index
    %c0_16 = arith.constant 0 : index
    %c0_17 = arith.constant 0 : index
    %24 = vector.load %arg6[%c0_15, %c0_16, %c0_17] : memref<1x8x1xf32, #tpu.memory_space<vmem>>, vector<1x8x1xf32>
    tpu.vector_store %arg6[%c0_15, %c0_16, %c0_17], %23 {strides = array<i32>} : memref<1x8x1xf32, #tpu.memory_space<vmem>>, vector<1x8x1xf32>,
    return
  }
  func.func @transform_0(%arg0: i32, %arg1: i32, %arg2: i32) -> (i32, i32) {
    %c1_i32 = arith.constant 1 : i32
    %0 = arith.muli %arg1, %c1_i32 : i32
    %1 = arith.addi %0, %arg2 : i32
    %c0_i32 = arith.constant 0 : i32
    return %arg0, %1 : i32, i32
  }
  func.func @transform_1(%arg0: i32, %arg1: i32, %arg2: i32) -> (i32, i32) {
    %c1_i32 = arith.constant 1 : i32
    %0 = arith.muli %arg1, %c1_i32 : i32
    %1 = arith.addi %0, %arg2 : i32
    %c0_i32 = arith.constant 0 : i32
    return %arg0, %1 : i32, i32
  }
  func.func @transform_2(%arg0: i32, %arg1: i32, %arg2: i32) -> (i32, i32, i32) {
    %c0_i32 = arith.constant 0 : i32
    %c0_i32_0 = arith.constant 0 : i32
    return %arg1, %arg0, %c0_i32 : i32, i32, i32
  }
  func.func @transform_3(%arg0: i32, %arg1: i32, %arg2: i32) -> (i32, i32, i32) {
    %c0_i32 = arith.constant 0 : i32
    %c0_i32_0 = arith.constant 0 : i32
    return %arg1, %arg0, %c0_i32 : i32, i32, i32
  }
}

</mosaic_0001>

<bundles_post_ra>
// kernel: tpu_custom_call.1
= control target key start
LH: loop header
LB: loop body
LE: loop exit
PB: predicated region body
PF: predicated region fallthrough
CT: control target
= control target key end

     0   :  { %9 = vsyncpa [#allocation3], 0  ;;  %s210_s0 = inlined_call_operand.hbm [shape: f32[8,256], index: 0, kind: input, shape index: {}]   ;;  %s211_s1 = inlined_call_operand.hbm [shape: s8[8,256], index: 1, kind: input, shape index: {}]   ;;  %s212_s2 = inlined_call_operand.vmem [shape: f32[1,8,1], index: 2, kind: output, shape index: {0}]   ;;  %s213_s3 = inlined_call_operand.vmem [shape: f32[1,8,1], index: 3, kind: output, shape index: {1}]  }
   0x1   :  { %10 = vsyncpa [#allocation5], 0  ;;  %s159_s12 = smov [#allocation2]   ;;  %s160_s14 = smov [#allocation4]  }
   0x2   :  { %s21_s13 = sshll.u32 %s159_s12, 4  ;;  %s35_s15 = sshll.u32 %s160_s14, 4  ;;  %s22_s13 = int_to_ptr.vmem [resolvable:$true] %s21_s13  ;;  %s36_s15 = int_to_ptr.vmem [resolvable:$true] %s35_s15 }
   0x3   :  { %s123_s16 = scalar_lea.vmem %s22_s13, 256  ;;  %p128_p1 = scmp.lt.s32.totalorder %s22_s13, %s22_s13 }
   0x4   :  { %p124_p0 = scmp.ne.s32.totalorder %s22_s13, %s123_s16  ;;  %p129_p2 = scmp.lt.s32.totalorder %s123_s16, %s123_s16 }
   0x6   :  { %p130_p3 = por %p129_p2, %p128_p1 }
   0x8   :  { %p131_p4 = pnand %p130_p3, %p124_p0 }
   0xa   :  { %134 = shalt.err (!%p131_p4)
}
   0xb   :  { %24 = dma.hbm_to_vmem [thread:$0]  %s210_s0, 256, %s22_s13, [#allocation3]  }
   0xc   :  { %s143_s19 = scalar_lea.vmem %s36_s15, 64  ;;  %p148_p6 = scmp.lt.s32.totalorder %s36_s15, %s36_s15 }
   0xd   :  { %p144_p5 = scmp.ne.s32.totalorder %s36_s15, %s143_s19  ;;  %p149_p7 = scmp.lt.s32.totalorder %s143_s19, %s143_s19 }
   0xf   :  { %p150_p8 = por %p149_p7, %p148_p6 }
  0x11   :  { %p151_p9 = pnand %p150_p8, %p144_p5 }
  0x13   :  { %154 = shalt.err (!%p151_p9)
}
  0x14   :  { %38 = dma.hbm_to_vmem [thread:$0]  %s211_s1, 64, %s36_s15, [#allocation5]  }
  0x15   :  { %155 = dma.done.wait [#allocation3], 256  }
  0x16   :  { %156 = vsyncadd [#allocation3], 4294967040 }
  0x17   :  { %157 = dma.done.wait [#allocation5], 64  }
  0x18   :  { %158 = vsyncadd [#allocation5], 4294967232  ;;  %vm53_vm0 = vcmask 7168   ;;  %v161_v0 = vmov 0.0   ;;  %v56_v1 = vld [vmem:[#allocation2] sm:$0xff]  ;;  %v57_v2 = vld [vmem:[#allocation2 + $0x8] sm:$0xff] }
  0x19   :  { %54 = vst.msk [vmem:[%s212_s2] sm:$0xff] %vm53_vm0, %v161_v0  ;;  %55 = vst.msk [vmem:[%s213_s3] sm:$0xff] %vm53_vm0, %v161_v0  ;;  %v102_v3 = vmul.f32 -1.442695, %v56_v1  ;;  %v103_v4 = vmul.f32 -1.442695, %v57_v2 }
  0x1a   :  { %v58_v9 = vld [vmem:[#allocation4] sm:$0xf] }
  0x1b   :  { %107 = vpow2.f32 %v102_v3  ;;  %v59_v10 = vunpack.c.0.s8 %v58_v9  ;;  %v60_v11 = vunpack.c.1.s8 %v58_v9 }
  0x1c   :  { %109 = vpow2.f32 %v103_v4 }
  0x1d   :  { %v61_v12 = vcvt.s32.f32 %v59_v10  ;;  %v62_v13 = vcvt.s32.f32 %v60_v11 }
  0x20   :  { %v75_v22 = vld [vmem:[%s212_s2] sm:$0xff] }
  0x21   :  { %v84_v25 = vld [vmem:[%s213_s3] sm:$0xff] }
  0x28   :  { %v108_v5 = vpop.eup %107 }
  0x29   :  { %v110_v6 = vpop.eup %109  ;;  %v69_v7 = vadd.f32 1.0, %v108_v5 }
  0x2a   :  { %v70_v8 = vadd.f32 1.0, %v110_v6 }
  0x2b   :  { %111 = vrcp.f32 %v69_v7 }
  0x2c   :  { %113 = vrcp.f32 %v70_v8 }
  0x38   :  { %v112_v14 = vpop.eup %111 }
  0x39   :  { %v114_v15 = vpop.eup %113  ;;  %v76_v16 = vmul.f32 %v112_v14, %v61_v12  ;;  %v85_v18 = vadd.f32 %v112_v14, %v61_v12 }
  0x3a   :  { %v77_v17 = vmul.f32 %v114_v15, %v62_v13  ;;  %v86_v19 = vadd.f32 %v114_v15, %v62_v13 }
  0x3c   :  { %v78_v20 = vadd.f32 %v77_v17, %v76_v16  ;;  %v87_v21 = vadd.f32 %v86_v19, %v85_v18 }
  0x3e   :  { %79 = vadd.xlane.f32.xlu0 %v78_v20 }
  0x42   :  { %88 = vadd.xlane.f32.xlu0 %v87_v21 }
  0xc7   :  { %v80_v23 = vpop.xlane.xlu0 %79 }
  0xc8   :  { %v81_v24 = vadd.f32 %v80_v23, %v75_v22 }
  0xca   :  { %83 = vst.msk [vmem:[%s212_s2] sm:$0xff] %vm53_vm0, %v81_v24 }
  0xcb   :  { %v89_v26 = vpop.xlane.xlu0 %88 }
  0xcc   :  { %v90_v27 = vadd.f32 %v89_v26, %v84_v25 }
  0xce   :  { %91 = vst.msk [vmem:[%s213_s3] sm:$0xff] %vm53_vm0, %v90_v27 }
  0xcf   :  { %100 = vsyncpa [#allocation3], 1 }
  0xd0   :  { %101 = vsyncpa [#allocation5], 1 }

</bundles_post_ra>
